<compile_context>
chip_gen: v7x
topology: tpu7x:2x2x1
jax: 0.10.0
libtpu: 0.0.40
codegen_flags: <defaults>
</compile_context>

<pallas_src>
import math

import jax
import jax.numpy as jnp
from jax import lax
from jax.experimental import pallas as pl
from jax.experimental.pallas import tpu as pltpu


def _round_up(v, m):
    return ((v + m - 1) // m) * m


def _posemb_kernel(x_ref, w_ref, p_ref, o_ref):
    # x_ref : (TB, 1)  f32   scalar timestep per row
    # w_ref : (1, W)   f32   [0 | 2*pi*w | 2*pi*w],            W = 1 + 2H
    # p_ref : (1, W)   f32   [0 | 0 ... 0 | pi/2 ... pi/2]
    # o_ref : (TB, W)  out   final [x | sin | cos] layout
    x = x_ref[...]                                        # (TB, 1)
    theta = x * w_ref[...] + p_ref[...]                   # (TB, W) VPU broadcast mul+add
    s = jnp.sin(theta)                                    # EUP; sin(t + pi/2) == cos(t)
    col = lax.broadcasted_iota(jnp.int32, s.shape, 1)     # lane index
    out = jnp.where(col == 0, jnp.broadcast_to(x, s.shape), s)   # col 0 passes x through
    o_ref[...] = out.astype(o_ref.dtype)                  # single unsliced lane-dense store


def _choose_block_b(b, w_out, out_itemsize, row_align):
    """Pick the B tile from a byte budget (not a fixed row count)."""
    target_block_bytes = 4 << 20                      # ~4 MiB moved per grid step
    # Per-row bytes: output row + the (tb,1)->(tb,128) lane-padded f32 x block.
    bytes_per_row = w_out * out_itemsize + 128 * 4
    tb = (target_block_bytes // bytes_per_row) // row_align * row_align
    tb = max(tb, row_align)
    # v7x megacore: once the whole problem moves >= ~2 MiB, make sure the
    # "parallel" B axis has at least 2 programs so both TensorCores get work.
    if b * bytes_per_row >= (2 << 20):
        half = _round_up(-(-b // 2), row_align)
        tb = min(tb, half)
    if tb >= b:
        return b                                      # full-extent block (layout-legal)
    return tb


def learned_sinusoidal_pos_emb(x, weights, *, block_b=None, out_dtype=jnp.float32):
    """x: (B,), weights: (half_dim,) -> (B, 1 + 2*half_dim) laid out [x, sin, cos]."""
    assert x.ndim == 1 and weights.ndim == 1
    b = x.shape[0]
    h = weights.shape[0]
    w_out = 1 + 2 * h
    out_itemsize = jnp.dtype(out_dtype).itemsize
    row_align = 16 if out_itemsize < 4 else 8         # sublane packing of the output

    # O(H) wrapper-side prep: fold 2*pi into the weights, duplicate for the
    # cos half, and build the pi/2 phase row.
    x2 = x.reshape(b, 1).astype(jnp.float32)
    w_scaled = weights.astype(jnp.float32) * (2.0 * math.pi)
    w_full = jnp.concatenate(
        [jnp.zeros((1,), jnp.float32), w_scaled, w_scaled]).reshape(1, w_out)
    phase = jnp.concatenate(
        [jnp.zeros((1 + h,), jnp.float32),
         jnp.full((h,), 0.5 * math.pi, jnp.float32)]).reshape(1, w_out)

    if block_b is not None:
        assert block_b % row_align == 0, (
            f"block_b must be a multiple of {row_align} for {jnp.dtype(out_dtype)}")
        tb = block_b if b > block_b else b
    else:
        tb = _choose_block_b(b, w_out, out_itemsize, row_align)
    grid = (pl.cdiv(b, tb),)

    # Explicit VMEM budget (double-buffered blocks, with layout padding).
    w_pad = _round_up(w_out, 128)
    tb_pad = _round_up(tb, row_align)
    vmem_est = (
        2 * tb_pad * w_pad * out_itemsize             # output block
        + 2 * _round_up(tb_pad, 8) * 128 * 4          # x block: (tb,1) pads to (tb,128)
        + 2 * 2 * 8 * w_pad * 4                       # w_full + phase: (1,W) pads to (8,Wpad)
    )
    vmem_limit = int(min(max(2 * vmem_est, 8 << 20), 48 << 20))

    cost = pl.CostEstimate(
        flops=3 * b * w_out,                          # mul + add + select per element
        transcendentals=b * w_out,                    # one sin per output element
        bytes_accessed=b * 4 + 2 * w_out * 4 + b * w_out * out_itemsize,
    )

    return pl.pallas_call(
        _posemb_kernel,
        out_shape=jax.ShapeDtypeStruct((b, w_out), out_dtype),
        grid_spec=pltpu.PrefetchScalarGridSpec(
            num_scalar_prefetch=0,
            grid=grid,
            in_specs=[
                pl.BlockSpec((tb, 1), lambda i: (i, 0)),
                pl.BlockSpec((1, w_out), lambda i: (0, 0)),
                pl.BlockSpec((1, w_out), lambda i: (0, 0)),
            ],
            out_specs=pl.BlockSpec((tb, w_out), lambda i: (i, 0)),
        ),
        compiler_params=pltpu.CompilerParams(
            dimension_semantics=("parallel",),        # shard B over v7x's 2 TCs
            vmem_limit_bytes=vmem_limit,
        ),
        cost_estimate=cost,
    )(x2, w_full, phase)


def _reference(x, weights):
    xb = x.reshape(-1, 1)
    freqs = xb * weights.reshape(1, -1) * 2.0 * math.pi
    return jnp.concatenate([xb, jnp.sin(freqs), jnp.cos(freqs)], axis=-1)


if __name__ == "__main__":
    dim = 32                       # must be even; half_dim = 16
    half_dim = dim // 2

    key = jax.random.PRNGKey(0)
    kx, kw, kx2 = jax.random.split(key, 3)
    # Deterministic "parameter" init (stands in for nn.Parameter(torch.randn(half_dim)))
    weights = jax.random.normal(kw, (half_dim,), dtype=jnp.float32)

    # Case 1: shipped shape (B = 8) -> single full-extent block, grid = (1,).
    x = jax.random.uniform(kx, (8,), dtype=jnp.float32)
    out = jax.block_until_ready(learned_sinusoidal_pos_emb(x, weights))
    ref = _reference(x, weights)
    assert out.shape == (8, 1 + dim), out.shape
    assert jnp.allclose(out, ref, atol=1e-5, rtol=1e-5), "mismatch vs reference (case 1)"

    # Case 2: B not a multiple of the tile -> exercises the tiled grid and the
    # masked partial last block (review correctness concern).
    xb = jax.random.uniform(kx2, (20,), dtype=jnp.float32)
    out2 = jax.block_until_ready(learned_sinusoidal_pos_emb(xb, weights, block_b=8))
    ref2 = _reference(xb, weights)
    assert out2.shape == (20, 1 + dim), out2.shape
    assert jnp.allclose(out2, ref2, atol=1e-5, rtol=1e-5), "mismatch vs reference (case 2)"

    print("KERNEL_OK")
</pallas_src>

<mosaic_0001>
module attributes {stable_mosaic.version = 11 : i64} {
  func.func @_posemb_kernel(%arg0: i32, %arg1: memref<8x1xf32, #tpu.memory_space<vmem>>, %arg2: memref<1x33xf32, #tpu.memory_space<vmem>>, %arg3: memref<1x33xf32, #tpu.memory_space<vmem>>, %arg4: memref<8x33xf32, #tpu.memory_space<vmem>>) attributes {dimension_semantics = [#tpu.dimension_semantics<parallel>], iteration_bounds = array<i64: 1>, scalar_prefetch = 0 : i64, scratch_operands = 0 : i64, tpu.core_type = #tpu.core_type<tc>, window_params = [{transform_indices = @transform_0, window_bounds = array<i64: 8, 1>}, {pipeline_mode = #tpu.pipeline_mode<synchronous>, transform_indices = @transform_1, window_bounds = array<i64: 1, 33>}, {pipeline_mode = #tpu.pipeline_mode<synchronous>, transform_indices = @transform_2, window_bounds = array<i64: 1, 33>}, {transform_indices = @transform_3, window_bounds = array<i64: 8, 33>}]} {
    %c0 = arith.constant 0 : index
    %c0_0 = arith.constant 0 : index
    %0 = vector.load %arg1[%c0, %c0_0] : memref<8x1xf32, #tpu.memory_space<vmem>>, vector<8x1xf32>
    %c0_1 = arith.constant 0 : index
    %c0_2 = arith.constant 0 : index
    %1 = vector.load %arg2[%c0_1, %c0_2] : memref<1x33xf32, #tpu.memory_space<vmem>>, vector<1x33xf32>
    %2 = vector.broadcast %0 : vector<8x1xf32> to vector<8x33xf32>
    %3 = vector.broadcast %1 : vector<1x33xf32> to vector<8x33xf32>
    %4 = arith.mulf %2, %3 : vector<8x33xf32>
    %c0_3 = arith.constant 0 : index
    %c0_4 = arith.constant 0 : index
    %5 = vector.load %arg3[%c0_3, %c0_4] : memref<1x33xf32, #tpu.memory_space<vmem>>, vector<1x33xf32>
    %6 = vector.broadcast %5 : vector<1x33xf32> to vector<8x33xf32>
    %7 = arith.addf %4, %6 : vector<8x33xf32>
    %8 = math.sin %7 : vector<8x33xf32>
    %9 = tpu.iota {dimensions = array<i32: 1>} : vector<8x33xi32>
    %c0_i32 = arith.constant 0 : i32
    %10 = vector.broadcast %c0_i32 : i32 to vector<8x33xi32>
    %11 = arith.cmpi eq, %9, %10 : vector<8x33xi32>
    %12 = vector.shape_cast %0 : vector<8x1xf32> to vector<8x1xf32>
    %13 = vector.broadcast %12 : vector<8x1xf32> to vector<8x33xf32>
    %14 = arith.select %11, %13, %8 : vector<8x33xi1>, vector<8x33xf32>
    %c0_5 = arith.constant 0 : index
    %c0_6 = arith.constant 0 : index
    %15 = vector.load %arg4[%c0_5, %c0_6] : memref<8x33xf32, #tpu.memory_space<vmem>>, vector<8x33xf32>
    tpu.vector_store %arg4[%c0_5, %c0_6], %14 {strides = array<i32>} : memref<8x33xf32, #tpu.memory_space<vmem>>, vector<8x33xf32>,
    return
  }
  func.func @transform_0(%arg0: i32) -> (i32, i32) {
    %c0_i32 = arith.constant 0 : i32
    %c0_i32_0 = arith.constant 0 : i32
    return %arg0, %c0_i32 : i32, i32
  }
  func.func @transform_1(%arg0: i32) -> (i32, i32) {
    %c0_i32 = arith.constant 0 : i32
    %c0_i32_0 = arith.constant 0 : i32
    %c0_i32_1 = arith.constant 0 : i32
    return %c0_i32, %c0_i32_0 : i32, i32
  }
  func.func @transform_2(%arg0: i32) -> (i32, i32) {
    %c0_i32 = arith.constant 0 : i32
    %c0_i32_0 = arith.constant 0 : i32
    %c0_i32_1 = arith.constant 0 : i32
    return %c0_i32, %c0_i32_0 : i32, i32
  }
  func.func @transform_3(%arg0: i32) -> (i32, i32) {
    %c0_i32 = arith.constant 0 : i32
    %c0_i32_0 = arith.constant 0 : i32
    return %arg0, %c0_i32 : i32, i32
  }
}

</mosaic_0001>

<bundles_post_ra>
// kernel: tpu_custom_call.1
= control target key start
LH: loop header
LB: loop body
LE: loop exit
PB: predicated region body
PF: predicated region fallthrough
CT: control target
= control target key end

     0   :  { %v208_v1 = vmov 0   ;;  %s282_s0 = inlined_call_operand.vmem [shape: f32[8,1], index: 0, kind: input, shape index: {}]   ;;  %s283_s1 = inlined_call_operand.vmem [shape: f32[1,33], index: 1, kind: input, shape index: {}]   ;;  %s284_s2 = inlined_call_operand.vmem [shape: f32[1,33], index: 2, kind: input, shape index: {}]   ;;  %s285_s3 = inlined_call_operand.hbm [shape: f32[8,33], index: 3, kind: output, shape index: {}]  }
   0x1   :  { %v15_v0 = vld [vmem:[%s282_s0] sm:$0xff]  ;;  %179 = vset.pattern.permute.xlu0 %v208_v1 }
   0x2   :  { %19 = vperm.xlu0 %179, %v15_v0  }
   0x3   :  { %8 = vsyncpa [#allocation3], 0  ;;  %v161_v2 = vld [vmem:[%s283_s1] ss:$0 sm:$0xff]  ;;  %v209_v17 = vmov 683565275  }
   0x4   :  { %v162_v3 = vld [vmem:[%s284_s2] ss:$0 sm:$0xff]  ;;  %v210_v19 = vmov 2475754826   ;;  %v211_v22 = vmov 2131351028  }
   0x5   :  { %v212_v25 = vmov 2102212464   ;;  %v213_v28 = vmov 920167782   ;;  %v214_v31 = vmov 1326507024  }
   0x6   :  { %s215_s0 = smov [#allocation2]   ;;  %vm145_vm14 = vcmask 269312  }
   0x7   :  { %s153_s1 = sshll.u32 %s215_s0, 4  ;;  %s154_s1 = int_to_ptr.vmem [resolvable:$true] %s153_s1 }
   0x8   :  { %s184_s2 = scalar_lea.vmem %s154_s1, 128  ;;  %p189_p1 = scmp.lt.s32.totalorder %s154_s1, %s154_s1 }
   0x9   :  { %p185_p0 = scmp.ne.s32.totalorder %s154_s1, %s184_s2  ;;  %p190_p2 = scmp.lt.s32.totalorder %s184_s2, %s184_s2 }
   0xb   :  { %p191_p3 = por %p190_p2, %p189_p1 }
   0xd   :  { %p192_p4 = pnand %p191_p3, %p185_p0 }
  0x81   :  { %v245_v4 = vpop.permute.xlu0 %19 }
  0x82   :  { %v28_v5 = vmul.f32 %v161_v2, %v245_v4 }
  0x84   :  { %v248_v6 = vadd.f32 %v162_v3, %v28_v5 }
  0x86   :  { %v40_v7 = vand.u32 2139095040, %v248_v6  ;;  %v37_v11 = vand.u32 2147483647, %v248_v6  ;;  %vm39_vm7 = vcmp.lt.s32.totalorder %v248_v6, 0  ;;  %vm129_vm13 = vweird.f32 %v248_v6 }
  0x88   :  { %v41_v8 = vshrl.u32 %v40_v7, 23  ;;  %v44_v14 = vand.u32 8388607, %v37_v11  ;;  %vm38_vm8 = vcmp.le.f32.partialorder %v37_v11, 0.7853982 }
  0x8a   :  { %v163_v9 = vadd.s32 4294967169, %v41_v8  ;;  %v45_v33 = vor.u32 8388608, %v44_v14 }
  0x8c   :  { %v47_v10 = vadd.s32 1, %v163_v9  ;;  %v85_v47 = vshll.u32 %v45_v33, 8 }
  0x8e   :  { %vm48_vm0 = vcmp.gt.s32.totalorder %v47_v10, 0 }
  0x8f   :  { %v49_v12 = vsel %vm48_vm0, %v47_v10, 0 }
  0x90   :  { %v51_v13 = vand.u32 31, %v49_v12  ;;  %v50_v16 = vshrl.u32 %v49_v12, 5 }
  0x92   :  { %v52_v15 = vsub.s32 32, %v51_v13  ;;  %v54_v18 = vshll.u32 %v209_v17, %v51_v13  ;;  %v57_v20 = vshll.u32 %v210_v19, %v51_v13  ;;  %v60_v24 = vshll.u32 %v211_v22, %v51_v13 }
  0x93   :  { %v63_v27 = vshll.u32 %v212_v25, %v51_v13  ;;  %v66_v30 = vshll.u32 %v213_v28, %v51_v13  ;;  %vm69_vm1 = vcmp.lt.s32.totalorder %v50_v16, 1  ;;  %vm72_vm2 = vcmp.lt.s32.totalorder %v50_v16, 4 }
  0x94   :  { %v55_v21 = vshrl.u32 %v210_v19, %v52_v15  ;;  %v58_v23 = vshrl.u32 %v211_v22, %v52_v15  ;;  %v61_v26 = vshrl.u32 %v212_v25, %v52_v15  ;;  %v64_v29 = vshrl.u32 %v213_v28, %v52_v15 }
  0x95   :  { %v67_v32 = vshrl.u32 %v214_v31, %v52_v15  ;;  %v53_v42 = vshrl.u32 %v209_v17, %v52_v15  ;;  %vm71_vm3 = vcmp.lt.s32.totalorder %v50_v16, 3  ;;  %vm70_vm4 = vcmp.lt.s32.totalorder %v50_v16, 2 }
  0x96   :  { %v56_v34 = vor.u32 %v55_v21, %v54_v18  ;;  %v59_v35 = vor.u32 %v58_v23, %v57_v20  ;;  %v62_v36 = vor.u32 %v61_v26, %v60_v24  ;;  %v65_v37 = vor.u32 %v64_v29, %v63_v27 }
  0x97   :  { %v68_v38 = vor.u32 %v67_v32, %v66_v30  ;;  %v141_v28 = vlaneseq }
  0x98   :  { %v74_v39 = vsel %vm72_vm2, %v62_v36, 2102212464  ;;  %v77_v40 = vsel %vm69_vm1, %v56_v34, %v59_v35  ;;  %v81_v41 = vsel %vm69_vm1, %v59_v35, %v62_v36  ;;  %v78_v43 = vsel %vm72_vm2, %v65_v37, 920167782 }
  0x99   :  { %v82_v44 = vsel %vm72_vm2, %v68_v38, 1326507024  ;;  %v79_v45 = vsel %vm71_vm3, %v62_v36, %v78_v43  ;;  %v73_v48 = vsel %vm69_vm1, %v53_v42, %v56_v34  ;;  %v75_v49 = vsel %vm71_vm3, %v59_v35, %v74_v39 }
  0x9a   :  { %v83_v46 = vsel %vm71_vm3, %v65_v37, %v82_v44  ;;  %v80_v50 = vsel %vm70_vm4, %v77_v40, %v79_v45  ;;  %v76_v56 = vsel %vm70_vm4, %v73_v48, %v75_v49  ;;  %v142_v31 = vand.u32 127, %v141_v28 }
  0x9b   :  { %v84_v51 = vsel %vm70_vm4, %v81_v41, %v83_v46  ;;  %v257_v54 = vmul.u32.u64.low %v85_v47, %v80_v50  ;;  %v258_v55 = vmul.u32.u64.high %v85_v47, %v80_v50, %v257_v54  ;;  %v92_v58 = vmul.u32 %v85_v47, %v76_v56 }
  0x9c   :  { %v254_v52 = vmul.u32.u64.low %v85_v47, %v84_v51  ;;  %v255_v53 = vmul.u32.u64.high %v85_v47, %v84_v51, %v254_v52  ;;  %vm143_vm11 = vcmp.eq.s32.totalorder %v142_v31, 0 }
  0x9d   :  { %v95_v57 = vadd.s32 1, %v258_v55 }
  0x9e   :  { %vm94_vm5 = vc.u32 %v255_v53, %v257_v54  ;;  %v93_v8 = vadd.s32 %v257_v54, %v255_v53 }
  0x9f   :  { %v96_v59 = vsel %vm94_vm5, %v95_v57, %v258_v55 }
  0xa0   :  { %v97_v60 = vadd.s32 %v96_v59, %v92_v58 }
  0xa2   :  { %v98_v61 = vadd.s32 536870912, %v97_v60 }
  0xa4   :  { %v99_v62 = vshrl.u32 %v98_v61, 30 }
  0xa6   :  { %v100_v63 = vshll.u32 %v99_v62, 30  ;;  %v123_v21 = vsub.s32 4, %v99_v62 }
  0xa8   :  { %v101_v0 = vsub.s32 %v97_v60, %v100_v63  ;;  %v124_v24 = vsel %vm39_vm7, %v123_v21, %v99_v62 }
  0xa9   :  { %v126_v26 = vsel %vm38_vm8, 0, %v124_v24 }
  0xaa   :  { %v103_v1 = vsub.s32 0, %v101_v0  ;;  %v130_v27 = vadd.s32 3, %v126_v26 }
  0xac   :  { %v164_v2 = vmin.u32 %v103_v1, %v101_v0  ;;  %v131_v29 = vand.u32 3, %v130_v27 }
  0xae   :  { %v105_v3 = vclz %v164_v2  ;;  %vm136_vm9 = vcmp.eq.s32.totalorder %v131_v29, 2  ;;  %vm133_vm10 = vcmp.eq.s32.totalorder %v131_v29, 0  ;;  %vm132_vm12 = vcmp.lt.s32.totalorder %v131_v29, 2 }
  0xb0   :  { %v165_v5 = vadd.s32 4294967294, %v105_v3 }
  0xb2   :  { %vm166_vm6 = vcmp.lt.s32.totalorder %v165_v5, 0 }
  0xb3   :  { %v108_v7 = vsel %vm166_vm6, 0, %v165_v5 }
  0xb4   :  { %v109_v9 = vsub.s32 32, %v108_v7  ;;  %v113_v10 = vsub.s32 4294967266, %v108_v7  ;;  %v110_v12 = vshll.u32 %v101_v0, %v108_v7 }
  0xb6   :  { %v111_v13 = vshrl.u32 %v93_v8, %v109_v9  ;;  %v114_v14 = vadd.s32 127, %v113_v10 }
  0xb8   :  { %v112_v15 = vor.u32 %v111_v13, %v110_v12  ;;  %v115_v16 = vshll.u32 %v114_v14, 23 }
  0xba   :  { %v116_v17 = vor.u32 4788187, %v115_v16  ;;  %v119_v19 = vcvt.s32.f32 %v112_v15 }
  0xbc   :  { %v117_v18 = vand.u32 2147483647, %v116_v17 }
  0xbe   :  { %v120_v20 = vmul.f32 %v119_v19, %v117_v18 }
  0xc0   :  { %v121_v22 = vxor.u32 2147483648, %v120_v20 }
  0xc2   :  { %v122_v23 = vsel %vm39_vm7, %v121_v22, %v120_v20 }
  0xc3   :  { %v125_v25 = vsel %vm38_vm8, %v248_v6, %v122_v23 }
  0xc4   :  { %180 = vcosq.f32 %v125_v25 }
  0xc5   :  { %182 = vsinq.f32 %v125_v25 }
  0xce   :  { %v181_v30 = vpop.eup %180 }
  0xcf   :  { %v183_v32 = vpop.eup %182  ;;  %v137_v33 = vxor.u32 2147483648, %v181_v30 }
  0xd0   :  { %v134_v34 = vxor.u32 2147483648, %v183_v32 }
  0xd1   :  { %v138_v35 = vsel %vm136_vm9, %v137_v33, %v183_v32 }
  0xd2   :  { %v135_v11 = vsel %vm133_vm10, %v181_v30, %v134_v34 }
  0xd3   :  { %v139_v36 = vsel %vm132_vm12, %v135_v11, %v138_v35 }
  0xd4   :  { %v140_v37 = vsel %vm129_vm13, nan, %v139_v36 }
  0xd5   :  { %v144_v38 = vsel %vm143_vm11, %v245_v4, %v140_v37 }
  0xd6   :  { %146 = vst.msk [vmem:[#allocation2] sm:$0xff] %vm145_vm14, %v144_v38 }
  0xd7   :  { %195 = shalt.err (!%p192_p4)
}
  0xd8   :  { %s196_s20 = scalar_lea.hbm %s285_s3, 128 }
  0xd9   :  { %p197_p5 = scmp.ne.s32.totalorder %s285_s3, %s196_s20  ;;  %p200_p6 = scmp.lt.u32.totalorder %s196_s20, %s285_s3 }
  0xdb   :  { %p202_p7 = pnand %p200_p6, %p197_p5 }
  0xdd   :  { %205 = shalt.err (!%p202_p7)
}
  0xde   :  { %156 = dma.vmem_to_hbm [thread:$0]  %s154_s1, 128, %s285_s3, [#allocation3]  }
  0xdf   :  { %206 = dma.done.wait [#allocation3], 128  }
  0xe0   :  { %207 = vsyncadd [#allocation3], 4294967168 }
  0xe1   :  { %160 = vsyncpa [#allocation3], 1 }

</bundles_post_ra>
